<compile_context>
chip_gen: v5e
topology: v5e:2x2
jax: 0.10.0
libtpu: 0.0.40
codegen_flags: <defaults>
</compile_context>

<pallas_src>
import jax
import jax.numpy as jnp
from jax.experimental import pallas as pl
from jax.experimental.pallas import tpu as pltpu


# --------------------------------------------------------------------------
# Kernel
# --------------------------------------------------------------------------
def attention_kernel(x_ref, w1_ref, b1_ref, w2_ref, o_ref):
    """One grid step processes a (TB, S, D) slab of batch elements.

    x_ref : (TB, S, D)  input block (native dtype)
    w1_ref: (D, D)      W1^T, (in, out) layout, cast to x's dtype (MXU-native)
    b1_ref: (1, D)      bias of the first Linear (f32)
    w2_ref: (1, D)      W2 as a row vector (second Linear has out_features=1), f32
    o_ref : (TB, S, D)  output block
    """
    tb, s, d = x_ref.shape
    x = x_ref[...]                                   # native dtype, no f32 shadow copy

    sublane = 16 if x.dtype == jnp.bfloat16 else 8
    if s % sublane == 0:
        # Minor (lane) dim D unchanged and S aligned to the sublane tile, so
        # collapsing (TB, S, D) -> (TB*S, D) is free index math (no relayout):
        # one big-M MXU matmul instead of TB small ones.
        xf = x.reshape(tb * s, d)
        h = jnp.tanh(
            jnp.dot(xf, w1_ref[...], preferred_element_type=jnp.float32)
            + b1_ref[...]                            # (1, D) broadcast, f32
        )                                            # (TB*S, D) f32
        # Linear(D, 1) as VPU multiply + lane (XLU) reduce: no MXU, no lane-
        # sparse (D, 1) weight tile.  b2 omitted (softmax shift-invariance).
        scores = jnp.sum(h * w2_ref[...], axis=-1, keepdims=True)   # (TB*S, 1)
        sg = scores.reshape(tb, s, 1)
    else:
        # Unaligned S: keep the 3-D form (batched matmul) rather than paying a
        # VMEM relayout copy inside the hot loop.
        h = jnp.tanh(
            jnp.einsum("bsd,de->bse", x, w1_ref[...],
                       preferred_element_type=jnp.float32)
            + b1_ref[...]
        )                                            # (TB, S, D) f32
        sg = jnp.sum(h * w2_ref[...], axis=-1, keepdims=True)       # (TB, S, 1)

    # Softmax over the sequence axis, per batch element.  Exact reciprocal:
    # the kernel is HBM-bandwidth bound, so the EUP-approx version buys
    # nothing and exact division keeps parity with the PyTorch module.
    m = jnp.max(sg, axis=1, keepdims=True)           # (TB, 1, 1)
    e = jnp.exp(sg - m)
    denom = jnp.sum(e, axis=1, keepdims=True)        # (TB, 1, 1)
    attn = e / denom                                 # (TB, S, 1) f32

    # Weighted output on native-dtype x (cast attn down instead of holding a
    # second f32 copy of the slab -- matters on v7x's 64 MiB VMEM).
    o_ref[...] = (x * attn.astype(x.dtype)).astype(o_ref.dtype)


# --------------------------------------------------------------------------
# Generation-aware sizing
# --------------------------------------------------------------------------
def _tpu_vmem_config():
    """(picker_budget_bytes, vmem_limit_bytes, min_grid_steps) for this chip."""
    vmem_capacity = None
    try:
        info = pltpu.get_tpu_info()
        vmem_capacity = getattr(info, "vmem_capacity_bytes", None)
    except Exception:  # pragma: no cover - conservative fallback off-TPU / old JAX
        vmem_capacity = None
    if not vmem_capacity:
        vmem_capacity = 64 * 1024 * 1024             # assume the tightest chip (v7x per-TC)

    if vmem_capacity <= 64 * 1024 * 1024:
        # v7x-class: 64 MiB VMEM per TensorCore, 2 TCs per chip sharing HBM.
        picker_budget = 24 * 1024 * 1024
        vmem_limit = 48 * 1024 * 1024
        min_grid_steps = 2                           # keep both TCs busy on the "parallel" axis
    else:
        # v5e / v6e: 128 MiB physical VMEM, single TensorCore.
        picker_budget = 48 * 1024 * 1024
        vmem_limit = 64 * 1024 * 1024
        min_grid_steps = 1
    return picker_budget, vmem_limit, min_grid_steps


def _pick_batch_block(batch, seq, dim, in_itemsize, *, vmem_budget_bytes,
                      min_grid_steps=1, target_block_bytes=2 * 1024 * 1024):
    """Largest divisor TB of `batch` whose working set fits the VMEM budget.

    Bytes-based: keep growing TB until the x block itself reaches
    ~`target_block_bytes` (memory-bound kernel -> big DMAs amortize the
    ~0.35 us per-step pipeline overhead).  The estimate counts the double-
    buffered in/out blocks at the input's native itemsize plus the f32
    in-kernel intermediates (h + softmax working set).
    """
    best = 1
    for tb in range(1, batch + 1):
        if batch % tb != 0:
            continue
        if batch >= min_grid_steps and (batch // tb) < min_grid_steps:
            continue                                  # keep >= min_grid_steps grid steps
        rows = tb * seq
        io_bytes = 2 * 2 * rows * dim * in_itemsize   # x in + out, double-buffered, native dtype
        interm_bytes = 2 * rows * dim * 4             # f32 h + f32 exp/attn working set
        if io_bytes + interm_bytes > vmem_budget_bytes:
            continue
        best = tb
        if rows * dim * in_itemsize >= target_block_bytes:
            break
    return best


# --------------------------------------------------------------------------
# Wrapper
# --------------------------------------------------------------------------
def attention_forward(x, W1, b1, W2, b2=None, batch_block=None):
    """Pallas forward of the PyTorch Attention module.

    x : (B, S, D);  W1: (D, D) in (out, in) layout;  b1: (D,);  W2: (1, D).
    b2 is accepted for API parity but intentionally IGNORED: softmax over the
    sequence axis is shift-invariant, so adding b2 to every score is a no-op.
    """
    B, S, D = x.shape
    # Operand layouts: W1 pre-transposed to (in, out) and cast to x's dtype so
    # the MXU sees matching (bf16-native on v6e/v7x) operands; b1 / W2 stay f32
    # for the post-matmul VPU math.
    w1_t = jnp.asarray(W1).T.astype(x.dtype)          # (D_in, D_out)
    b1_r = jnp.asarray(b1).reshape(1, D).astype(jnp.float32)
    w2_row = jnp.asarray(W2).reshape(1, D).astype(jnp.float32)

    picker_budget, vmem_limit, min_grid_steps = _tpu_vmem_config()
    tb = batch_block if batch_block is not None else _pick_batch_block(
        B, S, D, x.dtype.itemsize,
        vmem_budget_bytes=picker_budget, min_grid_steps=min_grid_steps)
    assert B % tb == 0, "batch_block must divide the batch size"
    # TODO(synk): ragged / prime batch sizes should be zero-padded to a nice
    # divisor instead of silently falling back to tb=1.

    def _const_spec(shape):
        ndim = len(shape)
        index_map = lambda b: (0,) * ndim
        try:
            # Grid-constant operand: a single buffer is enough (no re-DMA),
            # buys back VMEM for the data tiles (matters at production D).
            return pl.BlockSpec(shape, index_map, pipeline_mode=pl.Buffered(1))
        except (TypeError, AttributeError):
            # Older JAX without pipeline_mode: fall back to default buffering.
            return pl.BlockSpec(shape, index_map)

    itemsize = x.dtype.itemsize
    cost = pl.CostEstimate(
        flops=2 * B * S * D * D + 2 * B * S * D,                  # matmul + score reduce
        transcendentals=B * S * D + B * S,                        # tanh + exp
        bytes_accessed=2 * B * S * D * itemsize                   # x in + out
                       + D * D * w1_t.dtype.itemsize + 2 * D * 4, # weights/biases
    )

    return pl.pallas_call(
        attention_kernel,
        out_shape=jax.ShapeDtypeStruct((B, S, D), x.dtype),
        grid_spec=pltpu.PrefetchScalarGridSpec(
            num_scalar_prefetch=0,
            grid=(B // tb,),
            in_specs=[
                pl.BlockSpec((tb, S, D), lambda b: (b, 0, 0)),    # x
                _const_spec((D, D)),                              # W1^T (grid-constant)
                _const_spec((1, D)),                              # b1   (grid-constant)
                _const_spec((1, D)),                              # W2 row (grid-constant)
            ],
            out_specs=pl.BlockSpec((tb, S, D), lambda b: (b, 0, 0)),
        ),
        compiler_params=pltpu.CompilerParams(
            # Batch axis is embarrassingly parallel -> shards across the two
            # TensorCores on v7x; neutral on v5e/v6e (single TC).
            dimension_semantics=("parallel",),
            vmem_limit_bytes=vmem_limit,
        ),
        cost_estimate=cost,
    )(x, w1_t, b1_r, w2_row)


# --------------------------------------------------------------------------
# Pure-JAX reference (mirrors the PyTorch module exactly, including b2)
# --------------------------------------------------------------------------
def reference_forward(x, W1, b1, W2, b2):
    h = jnp.tanh(x @ W1.T + b1)                # (B, S, D)
    scores = h @ W2.T + b2                     # (B, S, 1)
    attn = jax.nn.softmax(scores, axis=1)      # softmax over the sequence dim
    return x * attn


if __name__ == "__main__":
    B, S, D = 8, 8, 32  # batch, sequence, input_dim (small demo shapes)

    key = jax.random.PRNGKey(0)
    kx, kw1, kb1, kw2, kb2 = jax.random.split(key, 5)

    x = jax.random.normal(kx, (B, S, D), dtype=jnp.float32)

    # Deterministic parameter init mimicking nn.Linear's U(-1/sqrt(in), 1/sqrt(in))
    bound = 1.0 / jnp.sqrt(jnp.float32(D))
    W1 = jax.random.uniform(kw1, (D, D), minval=-bound, maxval=bound, dtype=jnp.float32)  # (out, in)
    b1 = jax.random.uniform(kb1, (D,), minval=-bound, maxval=bound, dtype=jnp.float32)
    W2 = jax.random.uniform(kw2, (1, D), minval=-bound, maxval=bound, dtype=jnp.float32)  # (out, in)
    b2 = jax.random.uniform(kb2, (1,), minval=-bound, maxval=bound, dtype=jnp.float32)

    ref = reference_forward(x, W1, b1, W2, b2)

    # 1) Auto tile pick: exercises the bytes-based picker and the
    #    generation-aware VMEM budgets.
    out = jax.block_until_ready(attention_forward(x, W1, b1, W2, b2))
    assert out.shape == (B, S, D)
    assert jnp.allclose(out, ref, atol=1e-4, rtol=1e-4), "mismatch vs reference (auto tb)"

    # 2) Explicit multi-step grid: exercises the pipelined batched-blocking path.
    out2 = jax.block_until_ready(attention_forward(x, W1, b1, W2, b2, batch_block=4))
    assert jnp.allclose(out2, ref, atol=1e-4, rtol=1e-4), "mismatch vs reference (tb=4)"

    print("KERNEL_OK")
</pallas_src>

<mosaic_0001>
module attributes {stable_mosaic.version = 11 : i64} {
  func.func @attention_kernel(%arg0: i32, %arg1: memref<4x8x32xf32, #tpu.memory_space<vmem>>, %arg2: memref<32x32xf32, #tpu.memory_space<vmem>>, %arg3: memref<1x32xf32, #tpu.memory_space<vmem>>, %arg4: memref<1x32xf32, #tpu.memory_space<vmem>>, %arg5: memref<4x8x32xf32, #tpu.memory_space<vmem>>) attributes {dimension_semantics = [#tpu.dimension_semantics<parallel>], iteration_bounds = array<i64: 2>, scalar_prefetch = 0 : i64, scratch_operands = 0 : i64, tpu.core_type = #tpu.core_type<tc>, window_params = [{transform_indices = @transform_0, window_bounds = array<i64: 4, 8, 32>}, {pipeline_mode = #tpu.pipeline_mode<synchronous>, transform_indices = @transform_1, window_bounds = array<i64: 32, 32>}, {pipeline_mode = #tpu.pipeline_mode<synchronous>, transform_indices = @transform_2, window_bounds = array<i64: 1, 32>}, {pipeline_mode = #tpu.pipeline_mode<synchronous>, transform_indices = @transform_3, window_bounds = array<i64: 1, 32>}, {transform_indices = @transform_4, window_bounds = array<i64: 4, 8, 32>}]} {
    %c0 = arith.constant 0 : index
    %c0_0 = arith.constant 0 : index
    %c0_1 = arith.constant 0 : index
    %0 = vector.load %arg1[%c0, %c0_0, %c0_1] : memref<4x8x32xf32, #tpu.memory_space<vmem>>, vector<4x8x32xf32>
    %1 = vector.shape_cast %0 : vector<4x8x32xf32> to vector<32x32xf32>
    %c0_2 = arith.constant 0 : index
    %c0_3 = arith.constant 0 : index
    %2 = vector.load %arg2[%c0_2, %c0_3] : memref<32x32xf32, #tpu.memory_space<vmem>>, vector<32x32xf32>
    %cst = arith.constant dense<0.000000e+00> : vector<32x32xf32>
    %3 = tpu.matmul %1, %2, %cst {dimension_numbers = #tpu.dot_dimension_numbers<[1], [0], [0], [1], [0, 0, 1, 1], [], []>} : vector<32x32xf32>, vector<32x32xf32>, vector<32x32xf32> -> vector<32x32xf32>
    %c0_4 = arith.constant 0 : index
    %c0_5 = arith.constant 0 : index
    %4 = vector.load %arg3[%c0_4, %c0_5] : memref<1x32xf32, #tpu.memory_space<vmem>>, vector<1x32xf32>
    %5 = vector.broadcast %4 : vector<1x32xf32> to vector<32x32xf32>
    %6 = arith.addf %3, %5 : vector<32x32xf32>
    %7 = math.tanh %6 : vector<32x32xf32>
    %c0_6 = arith.constant 0 : index
    %c0_7 = arith.constant 0 : index
    %8 = vector.load %arg4[%c0_6, %c0_7] : memref<1x32xf32, #tpu.memory_space<vmem>>, vector<1x32xf32>
    %9 = vector.broadcast %8 : vector<1x32xf32> to vector<32x32xf32>
    %10 = arith.mulf %7, %9 : vector<32x32xf32>
    %cst_8 = arith.constant dense<0.000000e+00> : vector<32xf32>
    %11 = vector.multi_reduction <add>, %10, %cst_8 [1] : vector<32x32xf32> to vector<32xf32>
    %12 = vector.shape_cast %11 : vector<32xf32> to vector<32x1xf32>
    %13 = vector.shape_cast %12 : vector<32x1xf32> to vector<4x8x1xf32>
    %cst_9 = arith.constant dense<0xFF800000> : vector<4x1xf32>
    %14 = vector.multi_reduction <maximumf>, %13, %cst_9 [1] : vector<4x8x1xf32> to vector<4x1xf32>
    %15 = vector.shape_cast %14 : vector<4x1xf32> to vector<4x1x1xf32>
    %16 = vector.broadcast %15 : vector<4x1x1xf32> to vector<4x8x1xf32>
    %17 = arith.subf %13, %16 : vector<4x8x1xf32>
    %18 = math.exp %17 : vector<4x8x1xf32>
    %cst_10 = arith.constant dense<0.000000e+00> : vector<4x1xf32>
    %19 = vector.multi_reduction <add>, %18, %cst_10 [1] : vector<4x8x1xf32> to vector<4x1xf32>
    %20 = vector.shape_cast %19 : vector<4x1xf32> to vector<4x1x1xf32>
    %21 = vector.broadcast %20 : vector<4x1x1xf32> to vector<4x8x1xf32>
    %22 = arith.divf %18, %21 : vector<4x8x1xf32>
    %23 = vector.broadcast %22 : vector<4x8x1xf32> to vector<4x8x32xf32>
    %24 = arith.mulf %0, %23 : vector<4x8x32xf32>
    %c0_11 = arith.constant 0 : index
    %c0_12 = arith.constant 0 : index
    %c0_13 = arith.constant 0 : index
    %25 = vector.load %arg5[%c0_11, %c0_12, %c0_13] : memref<4x8x32xf32, #tpu.memory_space<vmem>>, vector<4x8x32xf32>
    tpu.vector_store %arg5[%c0_11, %c0_12, %c0_13], %24 {strides = array<i32>} : memref<4x8x32xf32, #tpu.memory_space<vmem>>, vector<4x8x32xf32>,
    return
  }
  func.func @transform_0(%arg0: i32) -> (i32, i32, i32) {
    %c0_i32 = arith.constant 0 : i32
    %c0_i32_0 = arith.constant 0 : i32
    %c0_i32_1 = arith.constant 0 : i32
    return %arg0, %c0_i32, %c0_i32_0 : i32, i32, i32
  }
  func.func @transform_1(%arg0: i32) -> (i32, i32) {
    %c0_i32 = arith.constant 0 : i32
    %c0_i32_0 = arith.constant 0 : i32
    %c0_i32_1 = arith.constant 0 : i32
    return %c0_i32, %c0_i32_0 : i32, i32
  }
  func.func @transform_2(%arg0: i32) -> (i32, i32) {
    %c0_i32 = arith.constant 0 : i32
    %c0_i32_0 = arith.constant 0 : i32
    %c0_i32_1 = arith.constant 0 : i32
    return %c0_i32, %c0_i32_0 : i32, i32
  }
  func.func @transform_3(%arg0: i32) -> (i32, i32) {
    %c0_i32 = arith.constant 0 : i32
    %c0_i32_0 = arith.constant 0 : i32
    %c0_i32_1 = arith.constant 0 : i32
    return %c0_i32, %c0_i32_0 : i32, i32
  }
  func.func @transform_4(%arg0: i32) -> (i32, i32, i32) {
    %c0_i32 = arith.constant 0 : i32
    %c0_i32_0 = arith.constant 0 : i32
    %c0_i32_1 = arith.constant 0 : i32
    return %arg0, %c0_i32, %c0_i32_0 : i32, i32, i32
  }
}

</mosaic_0001>

<bundles_post_ra>
// kernel: tpu_custom_call.1
= control target key start
LH: loop header
LB: loop body
LE: loop exit
PB: predicated region body
PF: predicated region fallthrough
CT: control target
= control target key end

     0   :  { %9 = vsyncpa [#allocation3], 0  ;;  %s1029_s0 = inlined_call_operand.hbm [shape: f32[8,8,32], index: 0, kind: input, shape index: {}]   ;;  %s1030_s1 = inlined_call_operand.hbm [shape: f32[32,32], index: 1, kind: input, shape index: {}]   ;;  %s1031_s2 = inlined_call_operand.vmem [shape: f32[1,32], index: 2, kind: input, shape index: {}]   ;;  %s1032_s3 = inlined_call_operand.vmem [shape: f32[1,32], index: 3, kind: input, shape index: {}]   ;;  %s1033_s4 = inlined_call_operand.hbm [shape: f32[8,8,32], index: 4, kind: output, shape index: {}]  }
   0x1   :  { %11 = vsyncpa [#allocation3 + $0x1], 0 }
   0x2   :  { %12 = vsyncpa [#allocation6], 0 }
   0x3   :  { %13 = vsyncpa [#allocation4], 0 }
   0x4   :  { %15 = vsyncpa [#allocation4 + $0x1], 0  ;;  %s825_s15 = smov 0   ;;  %s827_s16 = smov 0  }
   0x5   :  { %s829_s17 = smov 0   ;;  %s831_s18 = smov 0  }
   0x6 LB: > { %s846_s19 = sadd.s32 4294967295, %s793_s18   ;;  %s542_s20 = sadd.s32 4294967294, %s793_s18   ;;  %s793_s18 = sphi %s831_s18, %s1043_s18   ;;  %s789_s17 = sphi %s829_s17, %s1042_s17   ;;  %s785_s16 = sphi %s827_s16, %s1041_s16   ;;  %s781_s15 = sphi %s825_s15, %s1040_s15  }
   0x7   : > { %p41_p0 = scmp.ne.s32.totalorder %s785_s16, %s781_s15  ;;  %p42_p1 = scmp.eq.s32.totalorder %s846_s19, 0 }
   0x8   : > { %p128_p2 = scmp.eq.s32.totalorder %s846_s19, 1  ;;  %p134_p3 = scmp.eq.s32.totalorder %s542_s20, 1 }
   0x9   : > { %p855_p4 = por %p42_p1, %p41_p0  ;;  %p543_p5 = scmp.ge.s32.totalorder %s793_s18, 1 }
   0xa   : > { %p860_p6 = por %p134_p3, %p41_p0  ;;  %p141_p7 = scmp.lt.s32.totalorder %s793_s18, 3 }
   0xb   : > { %s152_s25 = sshll.u32 %s1030_s1, 4  ;;  %s795_s27 = smov [#allocation5]   ;;  %s153_s25 = int_to_ptr.hbm [resolvable:$true] %s152_s25 }
   0xc   : > { %p868_p8 = pnand %p543_p5, %p141_p7  ;;  %s154_s28 = sshll.u32 %s795_s27, 4  ;;  %s155_s28 = int_to_ptr.vmem [resolvable:$true] %s154_s28 }
   0xd   : > { %s878_s29 = sadd.s32 1, %s793_s18   ;;  %s796_s30 = smov 128  }
   0xe   : > { %p584_p9 = pneg %p868_p8  ;;  %s797_s5 = smov 8  }
   0xf   : > { %s25_s6 = ssub.s32 %s793_s18, %s878_s29  ;;  %s28_s7 = sadd.s32 1, %s789_s17 }
  0x10   : > { %p585_p10 = pnand %p584_p9, %p42_p1  ;;  %p26_p12 = scmp.eq.s32.totalorder %s25_s6, 0 }
  0x11   : > { %p35_p13 = scmp.ne.s32.totalorder %s789_s17, %s785_s16  ;;  %p36_p0 = scmp.eq.s32.totalorder %s793_s18, 0 }
  0x12   : > { %587 = dma.hbm_to_vmem [thread:$0]  (!%p585_p10), %s153_s25, 512, %s155_s28, [#allocation6], %s796_s30, %s796_s30, %s797_s5  }
  0x13   : > { %s890_s8 = scalar_select %p26_p12, %s789_s17, %s28_s7  }
  0x14   : > { %p894_p3 = por %p128_p2, %p35_p13  ;;  %p597_p5 = scmp.lt.s32.totalorder %s793_s18, 2 }
  0x15   : > { %s174_s10 = sand.u32 1, %s789_s17   ;;  %s562_s11 = sshll.u32 %s793_s18, 5 }
  0x16   : > { %p37_p7 = por %p36_p0, %p35_p13  ;;  %s546_s12 = sshll.u32 %s174_s10, 5 }
  0x17   : > { %s183_s20 = scalar_lea.hbm %s1029_s0, %s562_s11  ;;  %s178_s24 = scalar_lea.vmem [#allocation2], %s546_s12 }
  0x18   : > { %s184_s23 = sshll.u32 %s183_s20, 4  ;;  %s186_s25 = sshll.u32 %s178_s24, 4  ;;  %s185_s23 = int_to_ptr.hbm [resolvable:$true] %s184_s23  ;;  %s187_s25 = int_to_ptr.vmem [resolvable:$true] %s186_s25 }
  0x19   : > { %p904_p9 = pnand %p597_p5, %p37_p7  ;;  %s175_s28 = scalar_lea.sflag [#allocation3], %s174_s10 }
  0x1a   : > { %s693_s6 = sshra.s32 %s185_s23, 4  ;;  %s700_s12 = scalar_lea.hbm %s1029_s0, 64  ;;  %s694_s6 = int_to_ptr.hbm [resolvable:$true] %s693_s6 }
  0x1b   : > { %s695_s7 = scalar_lea.hbm %s694_s6, 32  ;;  %p697_p10 = pneg %p904_p9 }
  0x1c   : > { %p696_p2 = scmp.ne.s32.totalorder %s694_s6, %s695_s7  ;;  %p701_p0 = scmp.lt.s32.totalorder %s694_s6, %s1029_s0 }
  0x1d   : > { %p702_p5 = scmp.lt.s32.totalorder %s700_s12, %s695_s7 }
  0x1e   : > { %p698_p12 = pnand %p697_p10, %p696_p2 }
  0x1f   : > { %p703_p7 = por %p702_p5, %p701_p0 }
  0x20   : > { %p699_p13 = pneg %p698_p12 }
  0x22   : > { %p704_p11 = pnand %p703_p7, %p699_p13 }
  0x24   : > { %707 = shalt.err (!%p704_p11)
}
  0x25   : > { %591 = dma.hbm_to_vmem [thread:$0]  (!%p904_p9), %s185_s23, 512, %s187_s25, %s175_s28, %s796_s30, %s796_s30, %s797_s5  }
  0x26   : > { %198 = sbr.rel (%p868_p8) target bundleno = 382 (0x17e), region = 36  ;;  %s924_s10 = sand.u32 (!%p868_p8), 1, %s785_s16  }
  0x27   : > { %s550_s24 = sshll.u32 (!%p868_p8), %s924_s10, 5  ;;  %s201_s6 = scalar_lea.sflag (!%p868_p8), [#allocation3], %s924_s10 }
  0x28   : > { %s204_s7 = scalar_lea.vmem (!%p868_p8), [#allocation2], %s550_s24 }
  0x2b   : > { %768 = dma.done.wait (%p855_p4), %s201_s6, 512  }
  0x2c   : > { %770 = vsyncadd (%p855_p4), %s201_s6, 4294966784 }
  0x2d   : > { %772 = dma.done.wait (%p42_p1), [#allocation6], 512  }
  0x2e   : > { %774 = vsyncadd (%p42_p1), [#allocation6], 4294966784  ;;  %v244_v0 = vld [vmem:[#allocation5 + $0x18] sm:$0xff]  ;;  %v243_v1 = vld [vmem:[#allocation5 + $0x10] sm:$0xff]  ;;  %vm249_vm0 = vcmask 261120   ;;  %s979_s23 = scalar_lea.vmem [#allocation7], %s550_s24 }
  0x2f   : > { %274 = vmatpush.msra.mxu0 %v244_v0  ;;  %565 = vmatpush.msra.mxu2 %v244_v0  ;;  %v242_v2 = vld [vmem:[#allocation5 + $0x8] sm:$0xff]  ;;  %v241_v3 = vld [vmem:[#allocation5] sm:$0xff]  ;;  %v940_v5 = vld [vmem:[%s204_s7 + $0x10] sm:$0xff]  ;;  %s563_s25 = sshll.u32 %s846_s19, 5  ;;  %s456_s19 = sshll.u32 %s979_s23, 4  ;;  %s457_s19 = int_to_ptr.vmem [resolvable:$true] %s456_s19 }
  0x30   : > { %564 = vmatpush.msra.mxu1 %v244_v0  ;;  %566 = vmatpush.msra.mxu3 %v244_v0  ;;  %v938_v4 = vld [vmem:[%s204_s7] sm:$0xff]  ;;  %v942_v6 = vld [vmem:[%s204_s7 + $0x8] sm:$0xff]  ;;  %v944_v7 = vld [vmem:[%s204_s7 + $0x18] sm:$0xff]  ;;  %s455_s11 = scalar_lea.hbm %s1033_s4, %s563_s25  ;;  %s444_s12 = scalar_lea.sflag [#allocation4], %s924_s10 }
  0x31   : > { %275 = vmatpush.msra.mxu0 %v243_v1  ;;  %568 = vmatpush.msra.mxu2 %v243_v1  ;;  %v637_v8 = vld [vmem:[%s1031_s2] ss:$0 sm:$0xff]  ;;  %s458_s13 = sshll.u32 %s455_s11, 4  ;;  %s743_s7 = scalar_lea.hbm %s1033_s4, 64  ;;  %s459_s13 = int_to_ptr.hbm [resolvable:$true] %s458_s13 }
  0x32   : > { %567 = vmatpush.msra.mxu1 %v243_v1  ;;  %569 = vmatpush.msra.mxu3 %v243_v1  ;;  %v638_v14 = vld [vmem:[%s1032_s3] ss:$0 sm:$0xff]  ;;  %s737_s14 = sshra.s32 %s459_s13, 4  ;;  %s738_s14 = int_to_ptr.hbm [resolvable:$true] %s737_s14 }
  0x33   : > { %276 = vmatpush.msra.mxu0 %v242_v2  ;;  %571 = vmatpush.msra.mxu2 %v242_v2  ;;  %s739_s20 = scalar_lea.hbm %s738_s14, 32  ;;  %p744_p11 = scmp.lt.s32.totalorder %s738_s14, %s1033_s4 }
  0x34   : > { %570 = vmatpush.msra.mxu1 %v242_v2  ;;  %572 = vmatpush.msra.mxu3 %v242_v2  ;;  %p740_p1 = scmp.ne.s32.totalorder %s738_s14, %s739_s20  ;;  %p745_p9 = scmp.lt.s32.totalorder %s743_s7, %s739_s20 }
  0x35   : > { %277 = vmatpush.msra.mxu0 %v241_v3  ;;  %574 = vmatpush.msra.mxu2 %v241_v3 }
  0x36   : > { %553 = vmatmul.msk.f32.vlgmr.msra.gmra.mxu0 %vm249_vm0, %v938_v4  ;;  %555 = vmatmul.msk.f32.vlgmr.msra.gmra.mxu2 %vm249_vm0, %v940_v5  ;;  %p741_p4 = pnand %p740_p1, %p894_p3  ;;  %p746_p2 = por %p745_p9, %p744_p11 }
  0x37   : > { %573 = vmatpush.msra.mxu1 %v241_v3  ;;  %575 = vmatpush.msra.mxu3 %v241_v3 }
  0x38   : > { %554 = vmatmul.msk.f32.vlgmr.msra.gmra.mxu1 %vm249_vm0, %v942_v6  ;;  %556 = vmatmul.msk.f32.vlgmr.msra.gmra.mxu3 %vm249_vm0, %v944_v7  ;;  %p742_p8 = pneg %p741_p4 }
  0x3a   : > { %p747_p10 = pnand %p746_p2, %p742_p8 }
  0xb3   : > { %v279_v9 = vpop.f32.mrf.mxu0 }
  0xb4   : > { %v280_v10 = vadd.f32 %v637_v8, %v279_v9 }
  0xb5   : > { %v282_v11 = vpop.f32.mrf.mxu1 }
  0xb6   : > { %639 = vtanh.f32 %v280_v10  ;;  %v283_v12 = vadd.f32 %v637_v8, %v282_v11 }
  0xb8   : > { %641 = vtanh.f32 %v283_v12 }
  0xb9   : > { %v285_v13 = vpop.f32.mrf.mxu2 }
  0xba   : > { %v286_v15 = vadd.f32 %v637_v8, %v285_v13 }
  0xbb   : > { %v288_v16 = vpop.f32.mrf.mxu3 }
  0xbc   : > { %v640_v17 = vpop.eup %639  ;;  %643 = vtanh.f32 %v286_v15  ;;  %v289_v18 = vadd.f32 %v637_v8, %v288_v16 }
  0xbd   : > { %v299_v19 = vmul.f32 %v640_v17, %v638_v14 }
  0xbe   : > { %v642_v20 = vpop.eup %641  ;;  %645 = vtanh.f32 %v289_v18 }
  0xbf   : > { %v303_v21 = vsel %vm249_vm0, %v299_v19, 0.0  ;;  %v300_v22 = vmul.f32 %v642_v20, %v638_v14 }
  0xc0   : > { %304 = vadd.xlane.f32.xlu0 %v303_v21 }
  0xc1   : > { %v306_v27 = vsel %vm249_vm0, %v300_v22, 0.0 }
  0xc2   : > { %v644_v23 = vpop.eup %643 }
  0xc3   : > { %v301_v24 = vmul.f32 %v644_v23, %v638_v14 }
  0xc4   : > { %v646_v25 = vpop.eup %645 }
  0xc5   : > { %v309_v26 = vsel %vm249_vm0, %v301_v24, 0.0  ;;  %v302_v28 = vmul.f32 %v646_v25, %v638_v14 }
  0xc6   : > { %310 = vadd.xlane.f32.xlu1 %v309_v26 }
  0xc7   : > { %v312_v29 = vsel %vm249_vm0, %v302_v28, 0.0 }
  0xc8   : > { %307 = vadd.xlane.f32.xlu0 %v306_v27 }
  0xce   : > { %313 = vadd.xlane.f32.xlu1 %v312_v29 }
 0x133   : > { %v305_v30 = vpop.xlane.xlu0 %304 }
 0x134   : > { %v315_v31 = vrot.slane %v305_v30, 4 }
 0x136   : > { %v316_v32 = vmax.f32 %v305_v30, %v315_v31 }
 0x138   : > { %v317_v33 = vrot.slane %v316_v32, 2 }
 0x139   : > { %v311_v34 = vpop.xlane.xlu1 %310 }
 0x13a   : > { %v318_v35 = vmax.f32 %v316_v32, %v317_v33  ;;  %v327_v36 = vrot.slane %v311_v34, 4 }
 0x13b   : > { %v308_v37 = vpop.xlane.xlu0 %307 }
 0x13c   : > { %v319_v38 = vrot.slane %v318_v35, 1  ;;  %v328_v39 = vmax.f32 %v311_v34, %v327_v36  ;;  %v321_v40 = vrot.slane %v308_v37, 4 }
 0x13e   : > { %v320_v41 = vmax.f32 %v318_v35, %v319_v38  ;;  %v329_v42 = vrot.slane %v328_v39, 2  ;;  %v322_v43 = vmax.f32 %v308_v37, %v321_v40 }
 0x140   : > { %v339_v44 = vsub.f32 %v305_v30, %v320_v41  ;;  %v330_v45 = vmax.f32 %v328_v39, %v329_v42  ;;  %v323_v46 = vrot.slane %v322_v43, 2 }
 0x141   : > { %v314_v47 = vpop.xlane.xlu1 %313 }
 0x142   : > { %v343_v48 = vmul.f32 1.442695, %v339_v44  ;;  %v331_v49 = vrot.slane %v330_v45, 1  ;;  %v324_v50 = vmax.f32 %v322_v43, %v323_v46  ;;  %v333_v51 = vrot.slane %v314_v47, 4 }
 0x144   : > { %647 = vpow2.f32 %v343_v48  ;;  %v332_v52 = vmax.f32 %v330_v45, %v331_v49  ;;  %v325_v53 = vrot.slane %v324_v50, 1  ;;  %v334_v54 = vmax.f32 %v314_v47, %v333_v51 }
 0x146   : > { %v341_v55 = vsub.f32 %v311_v34, %v332_v52  ;;  %v326_v56 = vmax.f32 %v324_v50, %v325_v53  ;;  %v335_v57 = vrot.slane %v334_v54, 2 }
 0x148   : > { %v347_v58 = vmul.f32 1.442695, %v341_v55  ;;  %v340_v59 = vsub.f32 %v308_v37, %v326_v56  ;;  %v336_v60 = vmax.f32 %v334_v54, %v335_v57 }
 0x14a   : > { %v648_v61 = vpop.eup %647  ;;  %649 = vpow2.f32 %v347_v58  ;;  %v345_v62 = vmul.f32 1.442695, %v340_v59  ;;  %v337_v63 = vrot.slane %v336_v60, 1 }
 0x14b   : > { %v351_v0 = vrot.slane %v648_v61, 4 }
 0x14c   : > { %651 = vpow2.f32 %v345_v62  ;;  %v338_v1 = vmax.f32 %v336_v60, %v337_v63 }
 0x14d   : > { %v352_v2 = vadd.f32 %v648_v61, %v351_v0 }
 0x14e   : > { %v342_v3 = vsub.f32 %v314_v47, %v338_v1 }
 0x14f   : > { %v353_v8 = vrot.slane %v352_v2, 2 }
 0x150   : > { %v964_v9 = vpop.eup %649  ;;  %v349_v10 = vmul.f32 1.442695, %v342_v3 }
 0x151   : > { %v354_v11 = vadd.f32 %v353_v8, %v352_v2  ;;  %v363_v12 = vrot.slane %v964_v9, 4 }
 0x152   : > { %v967_v13 = vpop.eup %651  ;;  %653 = vpow2.f32 %v349_v10 }
 0x153   : > { %v355_v14 = vrot.slane %v354_v11, 1  ;;  %v364_v15 = vadd.f32 %v964_v9, %v363_v12  ;;  %v357_v16 = vrot.slane %v967_v13, 4 }
 0x155   : > { %v356_v17 = vadd.f32 %v355_v14, %v354_v11  ;;  %v365_v18 = vrot.slane %v364_v15, 2  ;;  %v358_v19 = vadd.f32 %v967_v13, %v357_v16 }
 0x157   : > { %655 = vrcp.f32 %v356_v17  ;;  %v366_v21 = vadd.f32 %v365_v18, %v364_v15  ;;  %v359_v22 = vrot.slane %v358_v19, 2  ;;  %v386_v35 = vand.u32 2147483648, %v356_v17 }
 0x158   : > { %v972_v20 = vpop.eup %653  ;;  %v384_v37 = vand.u32 2147483647, %v356_v17  ;;  %vm380_vm2 = vweird.f32 %v356_v17 }
 0x159   : > { %v369_v23 = vrot.slane %v972_v20, 4  ;;  %v367_v24 = vrot.slane %v366_v21, 1  ;;  %v360_v25 = vadd.f32 %v359_v22, %v358_v19  ;;  %v387_v42 = vor.u32 1.1754944e-38, %v386_v35 }
 0x15a   : > { %vm385_vm4 = vcmp.eq.f32.partialorder %v384_v37, 8.507059e+37 }
 0x15b   : > { %v370_v26 = vadd.f32 %v972_v20, %v369_v23  ;;  %v368_v27 = vadd.f32 %v367_v24, %v366_v21  ;;  %v361_v28 = vrot.slane %v360_v25, 1 }
 0x15d   : > { %v656_v29 = vpop.eup %655  ;;  %v371_v30 = vrot.slane %v370_v26, 2  ;;  %657 = vrcp.f32 %v368_v27  ;;  %v362_v32 = vadd.f32 %v361_v28, %v360_v25  ;;  %v416_v49 = vand.u32 2147483648, %v368_v27 }
 0x15e   : > { %v376_v31 = vmul.f32 %v656_v29, %v356_v17  ;;  %vm381_vm1 = vweird.f32 %v656_v29  ;;  %v414_v52 = vand.u32 2147483647, %v368_v27  ;;  %vm410_vm6 = vweird.f32 %v368_v27 }
 0x15f   : > { %v372_v33 = vadd.f32 %v371_v30, %v370_v26  ;;  %659 = vrcp.f32 %v362_v32  ;;  %vm382_vm3 = vmor %vm380_vm2, %vm381_vm1  ;;  %v401_v56 = vand.u32 2147483648, %v362_v32  ;;  %v417_v58 = vor.u32 1.1754944e-38, %v416_v49 }
 0x160   : > { %v377_v34 = vsub.f32 1.0, %v376_v31  ;;  %v399_v60 = vand.u32 2147483647, %v362_v32  ;;  %vm415_vm9 = vcmp.eq.f32.partialorder %v414_v52, 8.507059e+37  ;;  %vm395_vm10 = vweird.f32 %v362_v32 }
 0x161   : > { %v373_v38 = vrot.slane %v372_v33, 1  ;;  %v402_v1 = vor.u32 1.1754944e-38, %v401_v56 }
 0x162   : > { %v378_v36 = vmul.f32 %v656_v29, %v377_v34  ;;  %vm400_vm12 = vcmp.eq.f32.partialorder %v399_v60, 8.507059e+37 }
 0x163   : > { %v658_v39 = vpop.eup %657  ;;  %v374_v41 = vadd.f32 %v373_v38, %v372_v33 }
 0x164   : > { %v379_v40 = vadd.f32 %v656_v29, %v378_v36  ;;  %v406_v43 = vmul.f32 %v658_v39, %v368_v27  ;;  %vm411_vm5 = vweird.f32 %v658_v39 }
 0x165   : > { %661 = vrcp.f32 %v374_v41  ;;  %v660_v45 = vpop.eup %659  ;;  %vm412_vm7 = vmor %vm410_vm6, %vm411_vm5  ;;  %v429_v8 = vand.u32 2147483647, %v374_v41  ;;  %v431_v10 = vand.u32 2147483648, %v374_v41  ;;  %vm425_vm14 = vweird.f32 %v374_v41 }
 0x166   : > { %v383_v44 = vsel %vm382_vm3, %v656_v29, %v379_v40  ;;  %v407_v47 = vsub.f32 1.0, %v406_v43  ;;  %v391_v50 = vmul.f32 %v660_v45, %v362_v32  ;;  %vm396_vm8 = vweird.f32 %v660_v45 }
 0x167   : > { %v388_v46 = vsel %vm385_vm4, %v387_v42, %v383_v44  ;;  %vm397_vm11 = vmor %vm395_vm10, %vm396_vm8  ;;  %vm430_vm1 = vcmp.eq.f32.partialorder %v429_v8, 8.507059e+37 }
 0x168   : > { %v389_v48 = vmul.f32 %v648_v61, %v388_v46  ;;  %v408_v51 = vmul.f32 %v658_v39, %v407_v47  ;;  %v392_v54 = vsub.f32 1.0, %v391_v50 }
 0x16a   : > { %v435_v53 = vmul.f32 %v389_v48, %v938_v4  ;;  %v409_v55 = vadd.f32 %v658_v39, %v408_v51  ;;  %v393_v59 = vmul.f32 %v660_v45, %v392_v54 }
 0x16b   : > { %v662_v57 = vpop.eup %661 }
 0x16c   : > { %439 = vst.msk [vmem:[%s979_s23] sm:$0xff] %vm249_vm0, %v435_v53  ;;  %v413_v61 = vsel %vm412_vm7, %v658_v39, %v409_v55  ;;  %v421_v4 = vmul.f32 %v662_v57, %v374_v41  ;;  %v394_v63 = vadd.f32 %v660_v45, %v393_v59  ;;  %vm426_vm13 = vweird.f32 %v662_v57 }
 0x16d   : > { %v418_v62 = vsel %vm415_vm9, %v417_v58, %v413_v61  ;;  %vm427_vm15 = vmor %vm425_vm14, %vm426_vm13 }
 0x16e   : > { %v419_v0 = vmul.f32 %v964_v9, %v418_v62  ;;  %v422_v2 = vsub.f32 1.0, %v421_v4  ;;  %v398_v3 = vsel %vm397_vm11, %v660_v45, %v394_v63 }
 0x16f   : > { %v403_v12 = vsel %vm400_vm12, %v402_v1, %v398_v3 }
 0x170   : > { %v437_v11 = vmul.f32 %v419_v0, %v940_v5  ;;  %v423_v14 = vmul.f32 %v662_v57, %v422_v2  ;;  %v404_v15 = vmul.f32 %v967_v13, %v403_v12  ;;  %v432_v5 = vor.u32 1.1754944e-38, %v431_v10 }
 0x172   : > { %v424_v9 = vadd.f32 %v662_v57, %v423_v14  ;;  %441 = vst.msk [vmem:[%s979_s23 + $0x10] sm:$0xff] %vm249_vm0, %v437_v11  ;;  %v436_v16 = vmul.f32 %v404_v15, %v942_v6 }
 0x174   : > { %v428_v17 = vsel %vm427_vm15, %v662_v57, %v424_v9  ;;  %440 = vst.msk [vmem:[%s979_s23 + $0x8] sm:$0xff] %vm249_vm0, %v436_v16 }
 0x175   : > { %v433_v13 = vsel %vm430_vm1, %v432_v5, %v428_v17 }
 0x176   : > { %v434_v18 = vmul.f32 %v972_v20, %v433_v13 }
 0x178   : > { %v438_v19 = vmul.f32 %v434_v18, %v944_v7 }
 0x17a   : > { %442 = vst.msk [vmem:[%s979_s23 + $0x18] sm:$0xff] %vm249_vm0, %v438_v19 }
 0x17b   : > { %750 = shalt.err (!%p747_p10)
}
 0x17c   : > { %s798_s10 = smov 128   ;;  %s799_s30 = smov 8  }
 0x17d   : > { %582 = dma.vmem_to_hbm [thread:$0]  (%p894_p3), %s457_s19, 512, %s459_s13, %s444_s12, %s798_s10, %s798_s10, %s799_s30  }
 0x17e PF: > { %s473_s5 = sand.u32 1, %s781_s15   ;;  %p1039_p12 = scmp.ge.s32.totalorder %s793_s18, 2 }
 0x17f   : > { %s474_s23 = scalar_lea.sflag [#allocation4], %s473_s5 }
 0x180   : > { %p593_p13 = pnand %p1039_p12, %p860_p6 }
 0x182   : > { %p594_p0 = pneg %p593_p13 }
 0x184   : > { %776 = dma.done.wait (%p594_p0), %s474_s23, 512  }
 0x185   : > { %778 = vsyncadd (%p594_p0), %s474_s23, 4294966784  ;;  %p18_p5 = scmp.ge.s32.totalorder %s878_s29, 4   ;;  %s1040_s15 = smov %s785_s16 }
 0x186   : > { %s1041_s16 = smov %s789_s17  ;;  %s1042_s17 = smov %s890_s8 }
 0x187   : > { %s1043_s18 = smov %s878_s29  ;;  %20 = sbr.rel (!%p18_p5) target bundleno = 6 (0x6), region = 85 }
 0x18c   :  { %480 = vsyncpa [#allocation3], 1 }
 0x18d   :  { %482 = vsyncpa [#allocation3 + $0x1], 1 }
 0x18e   :  { %483 = vsyncpa [#allocation6], 1 }
 0x18f   :  { %484 = vsyncpa [#allocation4], 1 }
 0x190   :  { %486 = vsyncpa [#allocation4 + $0x1], 1 }

</bundles_post_ra>
